<compile_context>
chip_gen: v5e
topology: v5e:2x2
jax: 0.10.0
libtpu: 0.0.40
codegen_flags: <defaults>
</compile_context>

<pallas_src>
import math

import jax
import jax.numpy as jnp
import numpy as np
from jax.experimental import pallas as pl
from jax.experimental.pallas import tpu as pltpu

_LANES = 128
_EPS = 1e-5
_MAX_PACK_WIDTH = 1024  # cap on packed row width (vregs per logical group)


# ----------------------------------------------------------------------------
# Kernels
# ----------------------------------------------------------------------------
def _make_packed_kernel(C: int):
    """Lane-dense packed layout: each (k*C)-lane row holds k logical rows."""
    inv_C = 1.0 / float(C)

    def kernel(x_ref, w_ref, m_ref, mt_ref, o_ref):
        x = x_ref[...].astype(jnp.float32)       # (bm, width)
        w = w_ref[...].astype(jnp.float32)       # (1, width)  packed weight
        m = m_ref[...]                           # (width, k)  0/1 block-diagonal
        mt = mt_ref[...]                         # (k, width)  its transpose
        # Per-segment sums on the otherwise-idle MXU.
        s1 = jnp.dot(x, m, precision=jax.lax.Precision.HIGHEST,
                     preferred_element_type=jnp.float32)          # (bm, k)
        s2 = jnp.dot(x * x, m, precision=jax.lax.Precision.HIGHEST,
                     preferred_element_type=jnp.float32)          # (bm, k)
        mu = s1 * inv_C
        var = s2 * inv_C - mu * mu               # single-pass biased variance
        inv = jax.lax.rsqrt(var + _EPS)          # (bm, k)
        # Scatter each segment's scale back across its lanes (exact: 0/1 matrix).
        scale = jnp.dot(inv, mt, precision=jax.lax.Precision.HIGHEST,
                        preferred_element_type=jnp.float32)       # (bm, width)
        # Whole epilogue in f32, single cast at the store.
        o_ref[...] = (x * scale * w).astype(o_ref.dtype)

    return kernel


def _rowwise_kernel(x_ref, w_ref, o_ref):
    """Generic per-row kernel (used when packing does not apply)."""
    x = x_ref[...].astype(jnp.float32)           # (bm, C)
    w = w_ref[...].astype(jnp.float32)           # (1, C)
    inv_C = 1.0 / float(x.shape[-1])
    s1 = jnp.sum(x, axis=-1, keepdims=True)
    s2 = jnp.sum(x * x, axis=-1, keepdims=True)
    mu = s1 * inv_C
    var = s2 * inv_C - mu * mu                   # single-pass biased variance
    inv = jax.lax.rsqrt(var + _EPS)
    o_ref[...] = (x * (inv * w)).astype(o_ref.dtype)


# ----------------------------------------------------------------------------
# Wrapper helpers
# ----------------------------------------------------------------------------
def _vmem_budget():
    """Per-generation (input-block byte target, vmem_limit_bytes)."""
    vmem_cap = None
    try:
        info = pltpu.get_tpu_info()
        vmem_cap = getattr(info, "vmem_capacity_bytes", None)
    except Exception:
        vmem_cap = None
    if vmem_cap is None:
        # Unknown generation: conservative, v7x-safe sizing.
        return 4 * 1024 * 1024, 40 * 1024 * 1024
    if vmem_cap <= 80 * 1024 * 1024:
        # v7x-like: 64 MiB VMEM but 3.2 TB/s HBM -> bigger tiles matter, budget tight.
        return 4 * 1024 * 1024, 48 * 1024 * 1024
    # v5e / v6e: 128 MiB VMEM.
    return 8 * 1024 * 1024, 64 * 1024 * 1024


def _segment_matrices(C: int, k: int):
    """0/1 block-diagonal (k*C, k) matrix mapping lane -> segment, and its T."""
    seg = np.arange(k * C) // C
    m = (seg[:, None] == np.arange(k)[None, :]).astype(np.float32)
    return jnp.asarray(m), jnp.asarray(m.T)


def _norm_call(kernel, x2d, resident, target_bytes, vmem_limit):
    """One streaming pallas_call over rows of x2d; `resident` arrays stay in VMEM."""
    rows, width = x2d.shape
    itemsize = jnp.dtype(x2d.dtype).itemsize
    # Largest row tile under the byte target (amortize ~0.35us per-step overhead).
    bm = max(8, (target_bytes // max(1, width * itemsize)) // 8 * 8)
    if rows <= bm:
        bm = rows                     # single full-extent block (always legal)
        grid = (1,)
    else:
        grid = (pl.cdiv(rows, bm),)   # partial last block: writes are masked

    in_specs = [pl.BlockSpec((bm, width), lambda i: (i, 0))]
    for arr in resident:
        in_specs.append(pl.BlockSpec(arr.shape, lambda i, n=arr.ndim: (0,) * n))

    return pl.pallas_call(
        kernel,
        out_shape=jax.ShapeDtypeStruct((rows, width), x2d.dtype),
        grid_spec=pltpu.PrefetchScalarGridSpec(
            num_scalar_prefetch=0,
            grid=grid,
            in_specs=in_specs,
            out_specs=pl.BlockSpec((bm, width), lambda i: (i, 0)),
        ),
        compiler_params=pltpu.CompilerParams(
            dimension_semantics=("parallel",),
            vmem_limit_bytes=vmem_limit,
        ),
        cost_estimate=pl.CostEstimate(
            flops=int(10 * rows * width),
            transcendentals=int(rows),
            bytes_accessed=int(2 * rows * width * itemsize),
        ),
    )(x2d, *resident)


def biasfree_layernorm(x, weight):
    """x: (..., C); weight: (C,). Returns same shape/dtype as x."""
    orig_shape = x.shape
    C = int(orig_shape[-1])
    if x.size == 0:
        return x
    x2d = x.reshape(-1, C)
    N = x2d.shape[0]
    target_bytes, vmem_limit = _vmem_budget()

    k = _LANES // math.gcd(C, _LANES)
    width = k * C
    use_pack = (k > 1) and (width <= _MAX_PACK_WIDTH) and (N >= k)

    if not use_pack:
        # C is already a multiple of 128 (lane-dense as-is), or packing is not
        # worthwhile; one rowwise streaming call.
        out2d = _norm_call(_rowwise_kernel, x2d, (weight.reshape(1, C),),
                           target_bytes, vmem_limit)
        return out2d.reshape(orig_shape)

    # Packed path: k logical rows per 128-lane-multiple packed row.
    # (Under jit these tiny constants are built once per compilation.)
    w_packed = jnp.tile(weight.reshape(1, C), (1, k))
    m_mat, m_mat_t = _segment_matrices(C, k)
    kernel = _make_packed_kernel(C)

    n_main = (N // k) * k
    x_main = (x2d if n_main == N else x2d[:n_main]).reshape(n_main // k, width)
    out_main = _norm_call(kernel, x_main, (w_packed, m_mat, m_mat_t),
                          target_bytes, vmem_limit)
    out_main = out_main.reshape(n_main, C)

    if n_main == N:
        return out_main.reshape(orig_shape)

    # Remainder (< k rows): keep the bulk lane-dense, tiny rowwise call for the tail.
    out_rem = _norm_call(_rowwise_kernel, x2d[n_main:], (weight.reshape(1, C),),
                         target_bytes, vmem_limit)
    out2d = jnp.concatenate([out_main, out_rem], axis=0)
    return out2d.reshape(orig_shape)


# ----------------------------------------------------------------------------
# Reference + tests
# ----------------------------------------------------------------------------
def _reference(x, weight):
    x32 = x.astype(jnp.float32)
    mu = jnp.mean(x32, axis=-1, keepdims=True)
    var = jnp.mean((x32 - mu) ** 2, axis=-1, keepdims=True)   # biased variance
    return (x32 / jnp.sqrt(var + _EPS) * weight.astype(jnp.float32)).astype(x.dtype)


if __name__ == "__main__":
    key = jax.random.PRNGKey(0)
    k1, k2, k3, k4 = jax.random.split(key, 4)

    # 1) Module-implied shape: hidden=32 -> packed path (k=4, width=128).
    x = jax.random.normal(k1, (2, 8, 32), dtype=jnp.float32)
    w = jnp.ones((32,), dtype=jnp.float32)     # nn.Parameter(torch.ones(32))
    out = jax.block_until_ready(biasfree_layernorm(x, w))
    ref = _reference(x, w)
    assert jnp.allclose(out, ref, atol=1e-5, rtol=1e-5), "C=32 packed mismatch"

    # 2) C=192 -> generalized packing (k=2, width=384), non-unit weight.
    x2 = jax.random.normal(k2, (2, 8, 192), dtype=jnp.float32)
    w2 = 1.0 + 0.1 * jax.random.normal(k3, (192,), dtype=jnp.float32)
    out2 = jax.block_until_ready(biasfree_layernorm(x2, w2))
    ref2 = _reference(x2, w2)
    assert jnp.allclose(out2, ref2, atol=1e-5, rtol=1e-5), "C=192 packed mismatch"

    # 3) Row count not divisible by k: packed prefix + rowwise remainder.
    x3 = jax.random.normal(k4, (3, 5, 32), dtype=jnp.float32)   # N=15, k=4
    out3 = jax.block_until_ready(biasfree_layernorm(x3, w))
    ref3 = _reference(x3, w)
    assert jnp.allclose(out3, ref3, atol=1e-5, rtol=1e-5), "remainder-path mismatch"

    # 4) bf16 input (different cast/store path).
    xb = jax.random.normal(k1, (2, 8, 32), dtype=jnp.float32).astype(jnp.bfloat16)
    outb = jax.block_until_ready(biasfree_layernorm(xb, w))
    refb = _reference(xb, w)
    assert jnp.allclose(outb.astype(jnp.float32), refb.astype(jnp.float32),
                        atol=2e-2, rtol=2e-2), "bf16 mismatch"

    # 5) C=256: already lane-dense -> rowwise path.
    x5 = jax.random.normal(k2, (2, 4, 256), dtype=jnp.float32)
    w5 = jnp.ones((256,), dtype=jnp.float32)
    out5 = jax.block_until_ready(biasfree_layernorm(x5, w5))
    ref5 = _reference(x5, w5)
    assert jnp.allclose(out5, ref5, atol=1e-5, rtol=1e-5), "rowwise mismatch"

    print("KERNEL_OK")
</pallas_src>

<mosaic_0001>
module attributes {stable_mosaic.version = 11 : i64} {
  func.func @kernel(%arg0: i32, %arg1: memref<4x128xf32, #tpu.memory_space<vmem>>, %arg2: memref<1x128xf32, #tpu.memory_space<vmem>>, %arg3: memref<128x4xf32, #tpu.memory_space<vmem>>, %arg4: memref<4x128xf32, #tpu.memory_space<vmem>>, %arg5: memref<4x128xf32, #tpu.memory_space<vmem>>) attributes {dimension_semantics = [#tpu.dimension_semantics<parallel>], iteration_bounds = array<i64: 1>, scalar_prefetch = 0 : i64, scratch_operands = 0 : i64, tpu.core_type = #tpu.core_type<tc>, window_params = [{transform_indices = @transform_0, window_bounds = array<i64: 4, 128>}, {pipeline_mode = #tpu.pipeline_mode<synchronous>, transform_indices = @transform_1, window_bounds = array<i64: 1, 128>}, {pipeline_mode = #tpu.pipeline_mode<synchronous>, transform_indices = @transform_2, window_bounds = array<i64: 128, 4>}, {pipeline_mode = #tpu.pipeline_mode<synchronous>, transform_indices = @transform_3, window_bounds = array<i64: 4, 128>}, {transform_indices = @transform_4, window_bounds = array<i64: 4, 128>}]} {
    %c0 = arith.constant 0 : index
    %c0_0 = arith.constant 0 : index
    %0 = vector.load %arg1[%c0, %c0_0] : memref<4x128xf32, #tpu.memory_space<vmem>>, vector<4x128xf32>
    %c0_1 = arith.constant 0 : index
    %c0_2 = arith.constant 0 : index
    %1 = vector.load %arg2[%c0_1, %c0_2] : memref<1x128xf32, #tpu.memory_space<vmem>>, vector<1x128xf32>
    %c0_3 = arith.constant 0 : index
    %c0_4 = arith.constant 0 : index
    %2 = vector.load %arg3[%c0_3, %c0_4] : memref<128x4xf32, #tpu.memory_space<vmem>>, vector<128x4xf32>
    %c0_5 = arith.constant 0 : index
    %c0_6 = arith.constant 0 : index
    %3 = vector.load %arg4[%c0_5, %c0_6] : memref<4x128xf32, #tpu.memory_space<vmem>>, vector<4x128xf32>
    %cst = arith.constant dense<0.000000e+00> : vector<4x4xf32>
    %4 = tpu.matmul %0, %2, %cst {dimension_numbers = #tpu.dot_dimension_numbers<[1], [0], [0], [1], [0, 0, 1, 1], [], []>, precision = #tpu.contract_precision<fp32>} : vector<4x128xf32>, vector<128x4xf32>, vector<4x4xf32> -> vector<4x4xf32>
    %5 = arith.mulf %0, %0 : vector<4x128xf32>
    %cst_7 = arith.constant dense<0.000000e+00> : vector<4x4xf32>
    %6 = tpu.matmul %5, %2, %cst_7 {dimension_numbers = #tpu.dot_dimension_numbers<[1], [0], [0], [1], [0, 0, 1, 1], [], []>, precision = #tpu.contract_precision<fp32>} : vector<4x128xf32>, vector<128x4xf32>, vector<4x4xf32> -> vector<4x4xf32>
    %cst_8 = arith.constant 3.125000e-02 : f32
    %7 = vector.broadcast %cst_8 : f32 to vector<4x4xf32>
    %8 = arith.mulf %4, %7 : vector<4x4xf32>
    %cst_9 = arith.constant 3.125000e-02 : f32
    %9 = vector.broadcast %cst_9 : f32 to vector<4x4xf32>
    %10 = arith.mulf %6, %9 : vector<4x4xf32>
    %11 = arith.mulf %8, %8 : vector<4x4xf32>
    %12 = arith.subf %10, %11 : vector<4x4xf32>
    %cst_10 = arith.constant 9.99999974E-6 : f32
    %13 = vector.broadcast %cst_10 : f32 to vector<4x4xf32>
    %14 = arith.addf %12, %13 : vector<4x4xf32>
    %15 = math.rsqrt %14 : vector<4x4xf32>
    %cst_11 = arith.constant dense<0.000000e+00> : vector<4x128xf32>
    %16 = tpu.matmul %15, %3, %cst_11 {dimension_numbers = #tpu.dot_dimension_numbers<[1], [0], [0], [1], [0, 0, 1, 1], [], []>, precision = #tpu.contract_precision<fp32>} : vector<4x4xf32>, vector<4x128xf32>, vector<4x128xf32> -> vector<4x128xf32>
    %17 = arith.mulf %0, %16 : vector<4x128xf32>
    %18 = vector.broadcast %1 : vector<1x128xf32> to vector<4x128xf32>
    %19 = arith.mulf %17, %18 : vector<4x128xf32>
    %c0_12 = arith.constant 0 : index
    %c0_13 = arith.constant 0 : index
    %20 = vector.load %arg5[%c0_12, %c0_13] : memref<4x128xf32, #tpu.memory_space<vmem>>, vector<4x128xf32>
    tpu.vector_store %arg5[%c0_12, %c0_13], %19 {strides = array<i32>} : memref<4x128xf32, #tpu.memory_space<vmem>>, vector<4x128xf32>,
    return
  }
  func.func @transform_0(%arg0: i32) -> (i32, i32) {
    %c0_i32 = arith.constant 0 : i32
    %c0_i32_0 = arith.constant 0 : i32
    return %arg0, %c0_i32 : i32, i32
  }
  func.func @transform_1(%arg0: i32) -> (i32, i32) {
    %c0_i32 = arith.constant 0 : i32
    %c0_i32_0 = arith.constant 0 : i32
    %c0_i32_1 = arith.constant 0 : i32
    return %c0_i32, %c0_i32_0 : i32, i32
  }
  func.func @transform_2(%arg0: i32) -> (i32, i32) {
    %c0_i32 = arith.constant 0 : i32
    %c0_i32_0 = arith.constant 0 : i32
    %c0_i32_1 = arith.constant 0 : i32
    return %c0_i32, %c0_i32_0 : i32, i32
  }
  func.func @transform_3(%arg0: i32) -> (i32, i32) {
    %c0_i32 = arith.constant 0 : i32
    %c0_i32_0 = arith.constant 0 : i32
    %c0_i32_1 = arith.constant 0 : i32
    return %c0_i32, %c0_i32_0 : i32, i32
  }
  func.func @transform_4(%arg0: i32) -> (i32, i32) {
    %c0_i32 = arith.constant 0 : i32
    %c0_i32_0 = arith.constant 0 : i32
    return %arg0, %c0_i32 : i32, i32
  }
}

</mosaic_0001>

<bundles_post_ra>
// kernel: tpu_custom_call.1
= control target key start
LH: loop header
LB: loop body
LE: loop exit
PB: predicated region body
PF: predicated region fallthrough
CT: control target
= control target key end

     0   :  { %s1430_s0 = inlined_call_operand.vmem [shape: f32[4,128], index: 0, kind: input, shape index: {}]   ;;  %s1431_s1 = inlined_call_operand.vmem [shape: f32[1,128], index: 1, kind: input, shape index: {}]   ;;  %s1432_s2 = inlined_call_operand.vmem [shape: f32[128,4], index: 2, kind: input, shape index: {}]   ;;  %s1433_s3 = inlined_call_operand.vmem [shape: f32[4,128], index: 3, kind: input, shape index: {}]   ;;  %s1434_s4 = inlined_call_operand.hbm [shape: f32[4,128], index: 4, kind: output, shape index: {}]  }
   0x1   :  { %v35_v0 = vld [vmem:[%s1432_s2 + $0x78] sm:$0xff]  ;;  %v34_v1 = vld [vmem:[%s1432_s2 + $0x70] sm:$0xff]  ;;  %v33_v2 = vld [vmem:[%s1432_s2 + $0x68] sm:$0xff] }
   0x2   :  { %v976_v3 = vand.u32 4294901760, %v35_v0  ;;  %v978_v4 = vand.u32 4294901760, %v34_v1  ;;  %v980_v5 = vand.u32 4294901760, %v33_v2  ;;  %v32_v6 = vld [vmem:[%s1432_s2 + $0x60] sm:$0xff]  ;;  %v31_v7 = vld [vmem:[%s1432_s2 + $0x58] sm:$0xff]  ;;  %v30_v8 = vld [vmem:[%s1432_s2 + $0x50] sm:$0xff] }
   0x3   :  { %v991_v9 = vand.u32 4294901760, %v32_v6  ;;  %v993_v10 = vand.u32 4294901760, %v31_v7  ;;  %v995_v11 = vand.u32 4294901760, %v30_v8  ;;  %v29_v12 = vld [vmem:[%s1432_s2 + $0x48] sm:$0xff]  ;;  %v28_v13 = vld [vmem:[%s1432_s2 + $0x40] sm:$0xff]  ;;  %v27_v21 = vld [vmem:[%s1432_s2 + $0x38] sm:$0xff] }
   0x4   :  { %38 = vmatpush.msra.mxu0 %v976_v3  ;;  %v1005_v14 = vsub.f32 %v35_v0, %v976_v3  ;;  %v1008_v15 = vsub.f32 %v34_v1, %v978_v4  ;;  %234 = vmatpush.msra.mxu3 %v976_v3  ;;  %v1012_v16 = vsub.f32 %v33_v2, %v980_v5  ;;  %v1014_v17 = vand.u32 4294901760, %v29_v12 }
   0x5   :  { %v1017_v18 = vsub.f32 %v32_v6, %v991_v9  ;;  %v1020_v19 = vsub.f32 %v31_v7, %v993_v10  ;;  %v1023_v20 = vsub.f32 %v30_v8, %v995_v11  ;;  %v1039_v25 = vand.u32 4294901760, %v28_v13 }
   0x6   :  { %181 = vmatpush.msra.mxu2 %v1005_v14  ;;  %40 = vmatpush.msra.mxu0 %v978_v4  ;;  %v1031_v22 = vand.u32 4294901760, %v1005_v14  ;;  %v1034_v23 = vand.u32 4294901760, %v1008_v15  ;;  %v1037_v24 = vand.u32 4294901760, %v1012_v16 }
   0x7   :  { %9 = vsyncpa [#allocation3], 0  ;;  %236 = vmatpush.msra.mxu3 %v978_v4  ;;  %v1043_v26 = vand.u32 4294901760, %v1017_v18  ;;  %v1046_v27 = vand.u32 4294901760, %v1020_v19  ;;  %v1049_v28 = vsub.f32 %v29_v12, %v1014_v17  ;;  %v1059_v32 = vand.u32 4294901760, %v27_v21  ;;  %v26_v34 = vld [vmem:[%s1432_s2 + $0x30] sm:$0xff] }
   0x8   :  { %184 = vmatpush.msra.mxu2 %v1008_v15  ;;  %42 = vmatpush.msra.mxu0 %v980_v5  ;;  %v81_v29 = vsub.f32 %v1005_v14, %v1031_v22  ;;  %v87_v30 = vsub.f32 %v1008_v15, %v1034_v23  ;;  %v93_v31 = vsub.f32 %v1012_v16, %v1037_v24  ;;  %v1063_v33 = vand.u32 4294901760, %v1023_v20  ;;  %v25_v35 = vld [vmem:[%s1432_s2 + $0x28] sm:$0xff]  ;;  %v24_v42 = vld [vmem:[%s1432_s2 + $0x20] sm:$0xff]  ;;  %v23_v48 = vld [vmem:[%s1432_s2 + $0x18] sm:$0xff]  ;;  %s941_s24 = smov [#allocation2]   ;;  %s902_s28 = sshll.u32 %s1434_s4, 4  ;;  %s903_s28 = int_to_ptr.hbm [resolvable:$true] %s902_s28 }
   0x9   :  { %238 = vmatpush.msra.mxu3 %v980_v5  ;;  %v99_v38 = vsub.f32 %v1017_v18, %v1043_v26  ;;  %v1080_v39 = vsub.f32 %v28_v13, %v1039_v25  ;;  %v105_v40 = vsub.f32 %v1020_v19, %v1046_v27  ;;  %v1086_v41 = vand.u32 4294901760, %v1049_v28  ;;  %v22_v54 = vld [vmem:[%s1432_s2 + $0x10] sm:$0xff]  ;;  %v21_v60 = vld [vmem:[%s1432_s2 + $0x8] sm:$0xff]  ;;  %v20_v1 = vld [vmem:[%s1432_s2] sm:$0xff]  ;;  %s900_s25 = sshll.u32 %s941_s24, 4  ;;  %s901_s25 = int_to_ptr.vmem [resolvable:$true] %s900_s25 }
   0xa   :  { %v1071_v36 = vand.u32 4294901760, %v81_v29  ;;  %187 = vmatpush.msra.mxu2 %v1012_v16  ;;  %44 = vmatpush.msra.mxu0 %v991_v9  ;;  %v1075_v37 = vand.u32 4294901760, %v87_v30  ;;  %v1093_v43 = vand.u32 4294901760, %v93_v31  ;;  %v1096_v44 = vsub.f32 %v27_v21, %v1059_v32 }
   0xb   :  { %240 = vmatpush.msra.mxu3 %v991_v9  ;;  %v1098_v45 = vand.u32 4294901760, %v26_v34  ;;  %v1100_v46 = vand.u32 4294901760, %v25_v35  ;;  %v111_v47 = vsub.f32 %v1023_v20, %v1063_v33  ;;  %v1111_v49 = vand.u32 4294901760, %v99_v38 }
   0xc   :  { %83 = vmatpush.msra.mxu1 %v1071_v36  ;;  %190 = vmatpush.msra.mxu2 %v1017_v18  ;;  %v1114_v50 = vand.u32 4294901760, %v1080_v39  ;;  %v1119_v52 = vand.u32 4294901760, %v24_v42  ;;  %v117_v53 = vsub.f32 %v1049_v28, %v1086_v41  ;;  %v1130_v55 = vand.u32 4294901760, %v105_v40 }
   0xd   :  { %46 = vmatpush.msra.mxu0 %v993_v10  ;;  %242 = vmatpush.msra.mxu3 %v993_v10  ;;  %v1117_v51 = vsub.f32 %v26_v34, %v1098_v45  ;;  %v1133_v56 = vand.u32 4294901760, %v1096_v44  ;;  %v1136_v57 = vsub.f32 %v25_v35, %v1100_v46  ;;  %v1138_v58 = vand.u32 4294901760, %v23_v48 }
   0xe   :  { %89 = vmatpush.msra.mxu1 %v1075_v37  ;;  %193 = vmatpush.msra.mxu2 %v1020_v19  ;;  %v1141_v59 = vand.u32 4294901760, %v111_v47  ;;  %v123_v61 = vsub.f32 %v1080_v39, %v1114_v50  ;;  %v1155_v63 = vsub.f32 %v24_v42, %v1119_v52  ;;  %v1157_v0 = vand.u32 4294901760, %v22_v54 }
   0xf   :  { %48 = vmatpush.msra.mxu0 %v995_v11  ;;  %244 = vmatpush.msra.mxu3 %v995_v11  ;;  %v1152_v62 = vand.u32 4294901760, %v1117_v51  ;;  %v1163_v2 = vand.u32 4294901760, %v117_v53  ;;  %v129_v6 = vsub.f32 %v1096_v44, %v1133_v56  ;;  %v1171_v7 = vand.u32 4294901760, %v1136_v57 }
  0x10   :  { %95 = vmatpush.msra.mxu1 %v1093_v43  ;;  %196 = vmatpush.msra.mxu2 %v1023_v20  ;;  %1437 = vst [vmem:[#allocation5_spill] sm:$0xff] %v1155_v63  ;;  %v1174_v8 = vsub.f32 %v23_v48, %v1138_v58  ;;  %v1176_v12 = vand.u32 4294901760, %v21_v60  ;;  %v1180_v13 = vand.u32 4294901760, %v20_v1  ;;  %v1184_v21 = vand.u32 4294901760, %v123_v61 }
  0x11   :  { %50 = vmatpush.msra.mxu0 %v1014_v17  ;;  %246 = vmatpush.msra.mxu3 %v1014_v17  ;;  %v135_v29 = vsub.f32 %v1117_v51, %v1152_v62  ;;  %v1189_v30 = vand.u32 4294901760, %v1155_v63  ;;  %v1192_v31 = vsub.f32 %v22_v54, %v1157_v0  ;;  %v1198_v34 = vand.u32 4294901760, %v129_v6 }
  0x12   :  { %101 = vmatpush.msra.mxu1 %v1111_v49  ;;  %199 = vmatpush.msra.mxu2 %v1049_v28  ;;  %1438 = vst [vmem:[#allocation6_spill] sm:$0xff] %v1174_v8  ;;  %v141_v35 = vsub.f32 %v1136_v57, %v1171_v7  ;;  %v1203_v38 = vand.u32 4294901760, %v1174_v8  ;;  %v1206_v40 = vsub.f32 %v21_v60, %v1176_v12  ;;  %vm739_vm0 = vcmask 1043456  }
  0x13   :  { %52 = vmatpush.msra.mxu0 %v1039_v25  ;;  %248 = vmatpush.msra.mxu3 %v1039_v25  ;;  %v1212_v42 = vand.u32 4294901760, %v135_v29  ;;  %v147_v47 = vsub.f32 %v1155_v63, %v1189_v30  ;;  %v1217_v48 = vand.u32 4294901760, %v1192_v31  ;;  %v1220_v53 = vsub.f32 %v20_v1, %v1180_v13 }
  0x14   :  { %107 = vmatpush.msra.mxu1 %v1130_v55  ;;  %202 = vmatpush.msra.mxu2 %v1080_v39  ;;  %v1226_v54 = vand.u32 4294901760, %v141_v35  ;;  %v153_v60 = vsub.f32 %v1174_v8, %v1203_v38  ;;  %v1231_v61 = vand.u32 4294901760, %v1206_v40  ;;  %vm735_vm3 = vcmask 31744  }
  0x15   :  { %54 = vmatpush.msra.mxu0 %v1059_v32  ;;  %250 = vmatpush.msra.mxu3 %v1059_v32  ;;  %v1237_v1 = vand.u32 4294901760, %v147_v47  ;;  %v159_v6 = vsub.f32 %v1192_v31, %v1217_v48  ;;  %v1242_v29 = vand.u32 4294901760, %v1220_v53 }
  0x16   :  { %113 = vmatpush.msra.mxu1 %v1141_v59  ;;  %205 = vmatpush.msra.mxu2 %v1096_v44  ;;  %v1248_v35 = vand.u32 4294901760, %v153_v60  ;;  %v165_v47 = vsub.f32 %v1206_v40, %v1231_v61 }
  0x17   :  { %56 = vmatpush.msra.mxu0 %v1098_v45  ;;  %252 = vmatpush.msra.mxu3 %v1098_v45 }
  0x18   :  { %119 = vmatpush.msra.mxu1 %v1163_v2  ;;  %208 = vmatpush.msra.mxu2 %v1117_v51  ;;  %v1264_v60 = vand.u32 4294901760, %v165_v47 }
  0x19   :  { %58 = vmatpush.msra.mxu0 %v1100_v46  ;;  %254 = vmatpush.msra.mxu3 %v1100_v46 }
  0x1a   :  { %125 = vmatpush.msra.mxu1 %v1184_v21  ;;  %211 = vmatpush.msra.mxu2 %v1136_v57 }
  0x1b   :  { %60 = vmatpush.msra.mxu0 %v1119_v52  ;;  %256 = vmatpush.msra.mxu3 %v1119_v52 }
  0x1c   :  { %131 = vmatpush.msra.mxu1 %v1198_v34  ;;  %214 = vmatpush.msra.mxu2 %v1155_v63  ;;  %v171_v63 = vsub.f32 %v1220_v53, %v1242_v29 }
  0x1d   :  { %62 = vmatpush.msra.mxu0 %v1138_v58  ;;  %258 = vmatpush.msra.mxu3 %v1138_v58 }
  0x1e   :  { %137 = vmatpush.msra.mxu1 %v1212_v42  ;;  %217 = vmatpush.msra.mxu2 %v1174_v8  ;;  %v1256_v8 = vand.u32 4294901760, %v159_v6  ;;  %v1270_v6 = vand.u32 4294901760, %v171_v63 }
  0x1f   :  { %64 = vmatpush.msra.mxu0 %v1157_v0  ;;  %260 = vmatpush.msra.mxu3 %v1157_v0 }
  0x20   :  { %143 = vmatpush.msra.mxu1 %v1226_v54  ;;  %220 = vmatpush.msra.mxu2 %v1192_v31 }
  0x21   :  { %66 = vmatpush.msra.mxu0 %v1176_v12  ;;  %262 = vmatpush.msra.mxu3 %v1176_v12 }
  0x22   :  { %149 = vmatpush.msra.mxu1 %v1237_v1  ;;  %223 = vmatpush.msra.mxu2 %v1206_v40 }
  0x23   :  { %68 = vmatpush.msra.mxu0 %v1180_v13  ;;  %264 = vmatpush.msra.mxu3 %v1180_v13 }
  0x24   :  { %155 = vmatpush.msra.mxu1 %v1248_v35  ;;  %226 = vmatpush.msra.mxu2 %v1220_v53 }
  0x25   :  { %275 = vmatpush.msrb.mxu0 %v1031_v22  ;;  %425 = vmatpush.msrb.mxu3 %v1071_v36  ;;  %v1291_v36 = vld [vmem:[%s1430_s0] sm:$0xf] }
  0x26   :  { %380 = vmatpush.msrb.mxu2 %v976_v3  ;;  %161 = vmatpush.msra.mxu1 %v1256_v8  ;;  %v378_v63 = vmul.f32 %v1291_v36, %v1291_v36 }
  0x27   :  { %279 = vmatpush.msrb.mxu0 %v1034_v23  ;;  %431 = vmatpush.msrb.mxu3 %v1075_v37  ;;  %v1300_v37 = vand.u32 4294901760, %v1291_v36 }
  0x28   :  { %382 = vmatpush.msrb.mxu2 %v978_v4  ;;  %167 = vmatpush.msra.mxu1 %v1264_v60 }
  0x29   :  { %283 = vmatpush.msrb.mxu0 %v1037_v24  ;;  %437 = vmatpush.msrb.mxu3 %v1093_v43  ;;  %v70_v43 = vsub.f32 %v1291_v36, %v1300_v37 }
  0x2a   :  { %384 = vmatpush.msrb.mxu2 %v980_v5  ;;  %173 = vmatpush.msra.mxu1 %v1270_v6 }
  0x2b   :  { %287 = vmatpush.msrb.mxu0 %v1043_v26  ;;  %443 = vmatpush.msrb.mxu3 %v1111_v49  ;;  %v71_v49 = vand.u32 4294901760, %v70_v43 }
  0x2c   :  { %342 = vmatpush.msrb.mxu1 %v976_v3  ;;  %386 = vmatpush.msrb.mxu2 %v991_v9 }
  0x2d   :  { %291 = vmatpush.msrb.mxu0 %v1046_v27  ;;  %449 = vmatpush.msrb.mxu3 %v1130_v55  ;;  %v72_v55 = vsub.f32 %v70_v43, %v71_v49 }
  0x2e   :  { %344 = vmatpush.msrb.mxu1 %v978_v4  ;;  %388 = vmatpush.msrb.mxu2 %v993_v10 }
  0x2f   :  { %295 = vmatpush.msrb.mxu0 %v1063_v33  ;;  %455 = vmatpush.msrb.mxu3 %v1141_v59  ;;  %v73_v59 = vand.u32 4294901760, %v72_v55 }
  0x30   :  { %346 = vmatpush.msrb.mxu1 %v980_v5  ;;  %390 = vmatpush.msrb.mxu2 %v995_v11 }
  0x31   :  { %299 = vmatpush.msrb.mxu0 %v1086_v41  ;;  %461 = vmatpush.msrb.mxu3 %v1163_v2 }
  0x32   :  { %348 = vmatpush.msrb.mxu1 %v991_v9  ;;  %392 = vmatpush.msrb.mxu2 %v1014_v17 }
  0x33   :  { %303 = vmatpush.msrb.mxu0 %v1114_v50  ;;  %467 = vmatpush.msrb.mxu3 %v1184_v21 }
  0x34   :  { %350 = vmatpush.msrb.mxu1 %v993_v10  ;;  %394 = vmatpush.msrb.mxu2 %v1039_v25 }
  0x35   :  { %307 = vmatpush.msrb.mxu0 %v1133_v56  ;;  %473 = vmatpush.msrb.mxu3 %v1198_v34 }
  0x36   :  { %352 = vmatpush.msrb.mxu1 %v995_v11  ;;  %396 = vmatpush.msrb.mxu2 %v1059_v32 }
  0x37   :  { %311 = vmatpush.msrb.mxu0 %v1152_v62  ;;  %479 = vmatpush.msrb.mxu3 %v1212_v42 }
  0x38   :  { %354 = vmatpush.msrb.mxu1 %v1014_v17  ;;  %398 = vmatpush.msrb.mxu2 %v1098_v45 }
  0x39   :  { %315 = vmatpush.msrb.mxu0 %v1171_v7  ;;  %485 = vmatpush.msrb.mxu3 %v1226_v54 }
  0x3a   :  { %356 = vmatpush.msrb.mxu1 %v1039_v25  ;;  %400 = vmatpush.msrb.mxu2 %v1100_v46 }
  0x3b   :  { %319 = vmatpush.msrb.mxu0 %v1189_v30  ;;  %491 = vmatpush.msrb.mxu3 %v1237_v1 }
  0x3c   :  { %358 = vmatpush.msrb.mxu1 %v1059_v32  ;;  %402 = vmatpush.msrb.mxu2 %v1119_v52 }
  0x3d   :  { %323 = vmatpush.msrb.mxu0 %v1203_v38  ;;  %497 = vmatpush.msrb.mxu3 %v1248_v35 }
  0x3e   :  { %360 = vmatpush.msrb.mxu1 %v1098_v45  ;;  %404 = vmatpush.msrb.mxu2 %v1138_v58 }
  0x3f   :  { %327 = vmatpush.msrb.mxu0 %v1217_v48  ;;  %503 = vmatpush.msrb.mxu3 %v1256_v8 }
  0x40   :  { %362 = vmatpush.msrb.mxu1 %v1100_v46  ;;  %406 = vmatpush.msrb.mxu2 %v1157_v0 }
  0x41   :  { %331 = vmatpush.msrb.mxu0 %v1231_v61  ;;  %509 = vmatpush.msrb.mxu3 %v1264_v60 }
  0x42   :  { %364 = vmatpush.msrb.mxu1 %v1119_v52  ;;  %408 = vmatpush.msrb.mxu2 %v1176_v12 }
  0x43   :  { %229 = vmatmul.f32.vlgmr.msra.gmra.mxu2 %v70_v43  ;;  %335 = vmatpush.msrb.mxu0 %v1242_v29 }
  0x44   :  { %366 = vmatpush.msrb.mxu1 %v1138_v58  ;;  %410 = vmatpush.msrb.mxu2 %v1180_v13 }
  0x45   :  { %74 = vmatmul.f32.vlgmr.msra.gmra.mxu0 %v73_v59  ;;  %268 = vmatmul.f32.vlgmr.msra.gmra.mxu3 %v71_v49 }
  0x46   :  { %368 = vmatpush.msrb.mxu1 %v1157_v0  ;;  %523 = vmatpush.msra.mxu0 %v1005_v14  ;;  %v1357_v14 = vand.u32 4294901760, %v378_v63 }
  0x47   :  { %617 = vmatpush.msra.mxu2 %v1031_v22  ;;  %515 = vmatpush.msrb.mxu3 %v1270_v6 }
  0x48   :  { %370 = vmatpush.msrb.mxu1 %v1176_v12  ;;  %526 = vmatpush.msra.mxu0 %v1008_v15 }
  0x49   :  { %175 = vmatmul.f32.vlgmr.msra.gmra.mxu1 %v1300_v37  ;;  %621 = vmatpush.msra.mxu2 %v1034_v23  ;;  %v36_v23 = vld [vmem:[%s1433_s3] sm:$0xf] }
  0x4a   :  { %684 = vmatpush.msra.mxu3 %v976_v3  ;;  %372 = vmatpush.msrb.mxu1 %v1180_v13 }
  0x4b   :  { %529 = vmatpush.msra.mxu0 %v1012_v16  ;;  %625 = vmatpush.msra.mxu2 %v1037_v24  ;;  %v741_v24 = vsel %vm739_vm0, %v36_v23, 0 }
  0x4c   :  { %576 = vmatpush.msra.mxu1 %v976_v3  ;;  %686 = vmatpush.msra.mxu3 %v978_v4  ;;  %v412_v3 = vsub.f32 %v378_v63, %v1357_v14 }
  0x4d   :  { %532 = vmatpush.msra.mxu0 %v1017_v18  ;;  %629 = vmatpush.msra.mxu2 %v1043_v26  ;;  %v758_v26 = vand.u32 4294901760, %v741_v24 }
  0x4e   :  { %578 = vmatpush.msra.mxu1 %v978_v4  ;;  %688 = vmatpush.msra.mxu3 %v980_v5  ;;  %v413_v4 = vand.u32 4294901760, %v412_v3 }
  0x4f   :  { %337 = vmatmul.f32.vlgmr.msrb.gmra.mxu0 %v1300_v37  ;;  %633 = vmatpush.msra.mxu2 %v1046_v27 }
  0x50   :  { %580 = vmatpush.msra.mxu1 %v980_v5  ;;  %535 = vmatpush.msra.mxu0 %v1020_v19  ;;  %v414_v5 = vsub.f32 %v412_v3, %v413_v4 }
  0x51   :  { %690 = vmatpush.msra.mxu3 %v991_v9  ;;  %374 = vmatmul.f32.vlgmr.msrb.gmra.mxu1 %v1300_v37 }
  0x52   :  { %538 = vmatpush.msra.mxu0 %v1023_v20  ;;  %582 = vmatpush.msra.mxu1 %v991_v9  ;;  %v415_v9 = vand.u32 4294901760, %v414_v5 }
  0x53   :  { %637 = vmatpush.msra.mxu2 %v1063_v33  ;;  %692 = vmatpush.msra.mxu3 %v993_v10  ;;  %v785_v33 = vsub.f32 %v741_v24, %v758_v26 }
  0x54   :  { %541 = vmatpush.msra.mxu0 %v1049_v28  ;;  %584 = vmatpush.msra.mxu1 %v993_v10  ;;  %v1439_v10 = vld [vmem:[#allocation5_spill] sm:$0xff] }
  0x55   :  { %641 = vmatpush.msra.mxu2 %v1086_v41  ;;  %694 = vmatpush.msra.mxu3 %v995_v11 }
  0x56   :  { %544 = vmatpush.msra.mxu0 %v1080_v39  ;;  %586 = vmatpush.msra.mxu1 %v995_v11  ;;  %v1440_v11 = vld [vmem:[#allocation6_spill] sm:$0xff] }
  0x57   :  { %645 = vmatpush.msra.mxu2 %v1114_v50  ;;  %696 = vmatpush.msra.mxu3 %v1014_v17 }
  0x58   :  { %547 = vmatpush.msra.mxu0 %v1096_v44  ;;  %588 = vmatpush.msra.mxu1 %v1014_v17  ;;  %v786_v44 = vand.u32 4294901760, %v785_v33 }
  0x59   :  { %649 = vmatpush.msra.mxu2 %v1133_v56  ;;  %698 = vmatpush.msra.mxu3 %v1039_v25 }
  0x5a   :  { %550 = vmatpush.msra.mxu0 %v1117_v51  ;;  %590 = vmatpush.msra.mxu1 %v1039_v25 }
  0x5b   :  { %653 = vmatpush.msra.mxu2 %v1152_v62  ;;  %700 = vmatpush.msra.mxu3 %v1059_v32 }
  0x5c   :  { %553 = vmatpush.msra.mxu0 %v1136_v57  ;;  %592 = vmatpush.msra.mxu1 %v1059_v32 }
  0x5d   :  { %657 = vmatpush.msra.mxu2 %v1171_v7  ;;  %702 = vmatpush.msra.mxu3 %v1098_v45 }
  0x5e   :  { %556 = vmatpush.msra.mxu0 %v1439_v10  ;;  %594 = vmatpush.msra.mxu1 %v1098_v45 }
  0x5f   :  { %661 = vmatpush.msra.mxu2 %v1189_v30  ;;  %704 = vmatpush.msra.mxu3 %v1100_v46 }
  0x60   :  { %416 = vmatmul.f32.vlgmr.msrb.gmra.mxu2 %v415_v9  ;;  %517 = vmatmul.f32.vlgmr.msrb.gmra.mxu3 %v1357_v14 }
  0x61   :  { %559 = vmatpush.msra.mxu0 %v1440_v11  ;;  %596 = vmatpush.msra.mxu1 %v1100_v46  ;;  %v787_v46 = vsub.f32 %v785_v33, %v786_v44 }
  0x62   :  { %665 = vmatpush.msra.mxu2 %v1203_v38  ;;  %706 = vmatpush.msra.mxu3 %v1119_v52 }
  0x63   :  { %562 = vmatpush.msra.mxu0 %v1192_v31  ;;  %598 = vmatpush.msra.mxu1 %v1119_v52  ;;  %v788_v52 = vand.u32 4294901760, %v787_v46 }
  0x64   :  { %669 = vmatpush.msra.mxu2 %v1217_v48  ;;  %708 = vmatpush.msra.mxu3 %v1138_v58 }
  0x65   :  { %565 = vmatpush.msra.mxu0 %v1206_v40  ;;  %600 = vmatpush.msra.mxu1 %v1138_v58 }
  0x66   :  { %673 = vmatpush.msra.mxu2 %v1231_v61  ;;  %710 = vmatpush.msra.mxu3 %v1157_v0 }
  0x67   :  { %568 = vmatpush.msra.mxu0 %v1220_v53  ;;  %602 = vmatpush.msra.mxu1 %v1157_v0 }
  0x68   :  { %677 = vmatpush.msra.mxu2 %v1242_v29  ;;  %712 = vmatpush.msra.mxu3 %v1176_v12 }
  0x69   :  { %571 = vmatmul.f32.vlgmr.msra.gmra.mxu0 %v412_v3  ;;  %679 = vmatmul.f32.vlgmr.msra.gmra.mxu2 %v1357_v14 }
  0x6a   :  { %604 = vmatpush.msra.mxu1 %v1176_v12  ;;  %714 = vmatpush.msra.mxu3 %v1180_v13 }
  0x6b   :  { %716 = vmatmul.f32.vlgmr.msra.gmra.mxu3 %v1357_v14  ;;  %759 = vmatpush.msrb.mxu0 %v758_v26 }
  0x6c   :  { %606 = vmatpush.msra.mxu1 %v1180_v13  ;;  %835 = vmatpush.msrb.mxu3 %v758_v26 }
  0x6d   :  { %610 = vmatmul.f32.vlgmr.msra.gmra.mxu1 %v413_v4  ;;  %812 = vmatpush.msrb.mxu2 %v785_v33  ;;  %v912_v4 = vld [vmem:[%s1431_s1] ss:$0 sm:$0xff] }
  0x6e   :  { %861 = vmatpush.msra.mxu0 %v786_v44  ;;  %789 = vmatpush.msrb.mxu1 %v788_v52 }
  0x70   :  { %883 = vmatpush.msra.mxu1 %v758_v26 }
  0xc2   :  { %v75_v15 = vpop.f32.mrf.mxu0 }
  0xc6   :  { %v176_v16 = vpop.f32.mrf.mxu1  ;;  %v230_v18 = vpop.f32.mrf.mxu2 }
  0xc7   :  { %v177_v17 = vadd.f32 %v176_v16, %v75_v15 }
  0xc8   :  { %v269_v19 = vpop.f32.mrf.mxu3 }
  0xc9   :  { %v231_v20 = vadd.f32 %v230_v18, %v177_v17 }
  0xcb   :  { %v270_v25 = vadd.f32 %v269_v19, %v231_v20 }
  0xcc   :  { %v338_v22 = vpop.f32.mrf.mxu0 }
  0xcd   :  { %v339_v39 = vadd.f32 %v338_v22, %v270_v25 }
  0xce   :  { %v375_v27 = vpop.f32.mrf.mxu1 }
  0xcf   :  { %v376_v50 = vadd.f32 %v375_v27, %v339_v39 }
  0xd1   :  { %v720_v62 = vmul.f32 0.03125, %v376_v50 }
  0xd3   :  { %v722_v8 = vmul.f32 %v720_v62, %v720_v62 }
  0xe3   :  { %v417_v28 = vpop.f32.mrf.mxu2  ;;  %v518_v32 = vpop.f32.mrf.mxu3 }
  0xe4   :  { %v519_v41 = vadd.f32 %v518_v32, %v417_v28 }
  0xe6   :  { %v572_v45 = vpop.f32.mrf.mxu0 }
  0xe7   :  { %v573_v51 = vadd.f32 %v572_v45, %v519_v41 }
  0xea   :  { %v611_v56 = vpop.f32.mrf.mxu1 }
  0xeb   :  { %v612_v57 = vadd.f32 %v611_v56, %v573_v51 }
  0xec   :  { %v680_v58 = vpop.f32.mrf.mxu2 }
  0xed   :  { %v681_v0 = vadd.f32 %v680_v58, %v612_v57 }
  0xee   :  { %v717_v2 = vpop.f32.mrf.mxu3 }
  0xef   :  { %v718_v7 = vadd.f32 %v717_v2, %v681_v0 }
  0xf1   :  { %v721_v12 = vmul.f32 0.03125, %v718_v7 }
  0xf3   :  { %v723_v13 = vsub.f32 %v721_v12, %v722_v8 }
  0xf5   :  { %v724_v21 = vadd.f32 1e-05, %v723_v13 }
  0xf7   :  { %913 = vrsqrt.f32 %v724_v21  ;;  %vm731_vm2 = vweird.f32 %v724_v21 }
  0xfd   :  { %v914_v30 = vpop.eup %913 }
  0xfe   :  { %v726_v31 = vmul.f32 %v914_v30, %v724_v21  ;;  %vm732_vm1 = vweird.f32 %v914_v30 }
  0xff   :  { %vm733_vm4 = vmor %vm731_vm2, %vm732_vm1 }
 0x100   :  { %v727_v34 = vmul.f32 %v914_v30, %v726_v31 }
 0x102   :  { %v728_v38 = vmul.f32 0.5, %v727_v34 }
 0x104   :  { %v729_v40 = vsub.f32 1.5, %v728_v38 }
 0x106   :  { %v730_v42 = vmul.f32 %v914_v30, %v729_v40 }
 0x108   :  { %v734_v48 = vsel %vm733_vm4, %v914_v30, %v730_v42 }
 0x109   :  { %v737_v53 = vsel %vm735_vm3, %v734_v48, 0 }
 0x10a   :  { %v760_v54 = vand.u32 4294901760, %v737_v53 }
 0x10c   :  { %791 = vmatmul.f32.vlgmr.msrb.gmra.mxu1 %v760_v54  ;;  %v761_v61 = vsub.f32 %v737_v53, %v760_v54 }
 0x10e   :  { %815 = vmatmul.f32.vlgmr.msrb.gmra.mxu2 %v761_v61  ;;  %v762_v1 = vand.u32 4294901760, %v761_v61 }
 0x110   :  { %839 = vmatmul.f32.vlgmr.msrb.gmra.mxu3 %v762_v1  ;;  %v763_v29 = vsub.f32 %v761_v61, %v762_v1 }
 0x112   :  { %v764_v35 = vand.u32 4294901760, %v763_v29 }
 0x114   :  { %765 = vmatmul.f32.vlgmr.msrb.gmra.mxu0 %v764_v35  ;;  %885 = vmatmul.f32.vlgmr.msra.gmra.mxu1 %v760_v54 }
 0x11c   :  { %863 = vmatmul.f32.vlgmr.msra.gmra.mxu0 %v760_v54 }
 0x189   :  { %v792_v47 = vpop.f32.mrf.mxu1 }
 0x191   :  { %v766_v60 = vpop.f32.mrf.mxu0  ;;  %v816_v37 = vpop.f32.mrf.mxu2 }
 0x192   :  { %v793_v6 = vadd.f32 %v792_v47, %v766_v60  ;;  %v886_v14 = vpop.f32.mrf.mxu1 }
 0x193   :  { %v840_v49 = vpop.f32.mrf.mxu3 }
 0x194   :  { %v817_v43 = vadd.f32 %v816_v37, %v793_v6 }
 0x196   :  { %v841_v55 = vadd.f32 %v840_v49, %v817_v43 }
 0x199   :  { %v864_v59 = vpop.f32.mrf.mxu0 }
 0x19a   :  { %v865_v63 = vadd.f32 %v864_v59, %v841_v55 }
 0x19c   :  { %v887_v3 = vadd.f32 %v886_v14, %v865_v63 }
 0x19e   :  { %v889_v5 = vmul.f32 %v887_v3, %v1291_v36 }
 0x1a0   :  { %v893_v9 = vmul.f32 %v912_v4, %v889_v5 }
 0x1a2   :  { %894 = vst [vmem:[#allocation2] sm:$0xf] %v893_v9 }
 0x1a3   :  { %905 = dma.vmem_to_hbm [thread:$0]  %s901_s25, 64, %s903_s28, [#allocation3]  }
 0x1a4   :  { %939 = dma.done.wait [#allocation3], 64  }
 0x1a5   :  { %940 = vsyncadd [#allocation3], 4294967232 }
 0x1a6   :  { %910 = vsyncpa [#allocation3], 1 }

</bundles_post_ra>
